<compile_context>
chip_gen: v5e
topology: v5e:2x2
jax: 0.10.0
libtpu: 0.0.40
codegen_flags: <defaults>
</compile_context>

<pallas_src>
import jax
import jax.numpy as jnp
from jax.experimental import pallas as pl
from jax.experimental.pallas import tpu as pltpu

EPS = 1e-5  # PyTorch BatchNorm1d default eps

# Scoped-VMEM budget: 32 MiB is safe on v5e/v6e/v7x (raises v5e's 16 MiB default).
# At real channel counts raise further on v6e (128 MiB physical) and keep headroom
# under v7x's 64 MiB.
_VMEM_LIMIT = 32 * 1024 * 1024


def _conv3(wp_ref, wm_ref, wn_ref, x):
    """k=3, pad=1, stride=1 conv of one sample (C, L): three accumulated MXU dots."""
    _, L = x.shape
    cd = wm_ref.dtype                                    # MXU operand dtype (bf16/f32)
    lane = jax.lax.broadcasted_iota(jnp.int32, (1, L), 1)
    zero = jnp.zeros_like(x)
    prev = jnp.where(lane == 0, zero, jnp.roll(x, 1, axis=1))       # x[:, l-1], 0 at l=0
    nxt = jnp.where(lane == L - 1, zero, jnp.roll(x, -1, axis=1))   # x[:, l+1], 0 at l=L-1
    # TODO(synk): at real channel counts keep x/prev/nxt in bf16 end-to-end to halve the
    #             vreg footprint; f32 taps here keep the f32 verification path exact.
    acc = jnp.dot(wp_ref[...], prev.astype(cd), preferred_element_type=jnp.float32)
    acc = acc + jnp.dot(wm_ref[...], x.astype(cd), preferred_element_type=jnp.float32)
    acc = acc + jnp.dot(wn_ref[...], nxt.astype(cd), preferred_element_type=jnp.float32)
    return acc                                           # (Cout, L) f32


def _conv1_ds_kernel(x_ref, w1p_ref, w1m_ref, w1n_ref, wds_ref,
                     c1_ref, ds_ref, stats_ref):
    """conv1 (k=3,p=1) + 1x1 downsample conv on one sample; accumulate BN batch stats."""
    n = pl.program_id(0)
    x = x_ref[...]                                        # (Cin, L) f32
    c1 = _conv3(w1p_ref, w1m_ref, w1n_ref, x)             # (Cout, L)
    ds = jnp.dot(wds_ref[...], x.astype(wds_ref.dtype),
                 preferred_element_type=jnp.float32)      # (Cout, L)
    c1_ref[...] = c1
    ds_ref[...] = ds

    # Grid-resident per-channel sum / sum-of-squares -> global batch statistics.
    # TODO(synk): one-pass sum/sumsq can cancel for large-mean activations; switch to a
    #             centered two-pass accumulation far outside these scales.
    @pl.when(n == 0)
    def _init():
        stats_ref[...] = jnp.zeros_like(stats_ref)

    stats_ref[...] += jnp.concatenate(
        [jnp.sum(c1, axis=1, keepdims=True),
         jnp.sum(c1 * c1, axis=1, keepdims=True),
         jnp.sum(ds, axis=1, keepdims=True),
         jnp.sum(ds * ds, axis=1, keepdims=True)], axis=1)


def _bn1_relu_conv2_kernel(c1_ref, fold1_ref, w2p_ref, w2m_ref, w2n_ref,
                           c2_ref, stats_ref):
    """folded BN1 + ReLU + conv2 (k=3,p=1) on one sample; accumulate BN2 batch stats."""
    n = pl.program_id(0)
    s1 = fold1_ref[:, 0:1]                                # (Cout, 1) folded scale
    b1 = fold1_ref[:, 1:2]                                # (Cout, 1) folded shift
    h = jnp.maximum(c1_ref[...] * s1 + b1, 0.0)           # BN as one mul+add, then ReLU
    c2 = _conv3(w2p_ref, w2m_ref, w2n_ref, h)
    c2_ref[...] = c2

    @pl.when(n == 0)
    def _init():
        stats_ref[...] = jnp.zeros_like(stats_ref)

    stats_ref[...] += jnp.concatenate(
        [jnp.sum(c2, axis=1, keepdims=True),
         jnp.sum(c2 * c2, axis=1, keepdims=True)], axis=1)


def _finalize_kernel(c2_ref, ds_ref, fold2_ref, foldds_ref, out_ref):
    """folded BN2 + folded downsample-BN + residual add + ReLU (pure elementwise)."""
    y = c2_ref[...] * fold2_ref[:, 0:1] + fold2_ref[:, 1:2]
    r = ds_ref[...] * foldds_ref[:, 0:1] + foldds_ref[:, 1:2]
    out_ref[...] = jnp.maximum(y + r, 0.0).astype(out_ref.dtype)


def _const_spec(shape):
    zeros = (0,) * len(shape)
    return pl.BlockSpec(shape, lambda n, _z=zeros: _z)


def _sample_spec(c, length):
    return pl.BlockSpec((None, c, length), lambda n: (n, 0, 0))


def _fold_bn(sum_, sumsq, count, gamma, beta):
    """Fold train-mode BN (biased variance) into per-channel scale/shift (Cout, 2)."""
    mean = sum_ / count
    var = sumsq / count - mean * mean
    s = gamma * jax.lax.rsqrt(var + EPS)
    b = beta - mean * s
    return jnp.stack([s, b], axis=1).astype(jnp.float32)


def residual_block(x_ncl, params, *, stride=1, matmul_dtype=jnp.bfloat16):
    """x_ncl: (N, Cin, L) float32 in PyTorch Conv1d layout. Returns (N, Cout, L)."""
    if stride != 1:
        # TODO(synk): stride != 1 (strided conv1 / strided 1x1 downsample) not implemented.
        raise NotImplementedError("stride != 1 is not implemented")

    N, Cin, L = x_ncl.shape
    Cout = params["w1"].shape[0]
    has_ds = Cin != Cout                       # stride == 1, downsample iff channel change
    count = jnp.float32(N * L)
    x = x_ncl.astype(jnp.float32)

    # tap-major weight split: w[:, :, k] for k in {0: l-1, 1: l, 2: l+1}
    w1p, w1m, w1n = (params["w1"][:, :, k].astype(matmul_dtype) for k in range(3))
    w2p, w2m, w2n = (params["w2"][:, :, k].astype(matmul_dtype) for k in range(3))
    if has_ds:
        wds = params["wds"][:, :, 0].astype(matmul_dtype)
    else:
        # identity shortcut: route x through a 1x1 identity conv + identity "BN"
        # so the same kernels cover both cases (extra 1x1 matmul is negligible).
        wds = jnp.eye(Cout, dtype=matmul_dtype)

    cparams_acc = pltpu.CompilerParams(
        dimension_semantics=("arbitrary",),    # grid-resident BN-stat accumulator
        vmem_limit_bytes=_VMEM_LIMIT)
    cparams_par = pltpu.CompilerParams(
        dimension_semantics=("parallel",),     # no cross-tile state -> v7x megacore
        vmem_limit_bytes=_VMEM_LIMIT)

    # --- pass 1: conv1 + downsample conv, batch statistics for bn1 / bn_ds -----------
    c1_raw, ds_raw, stats1 = pl.pallas_call(
        _conv1_ds_kernel,
        out_shape=(jax.ShapeDtypeStruct((N, Cout, L), jnp.float32),
                   jax.ShapeDtypeStruct((N, Cout, L), jnp.float32),
                   jax.ShapeDtypeStruct((Cout, 4), jnp.float32)),
        grid_spec=pltpu.PrefetchScalarGridSpec(
            num_scalar_prefetch=0,
            grid=(N,),
            in_specs=[_sample_spec(Cin, L),
                      _const_spec(w1p.shape), _const_spec(w1m.shape),
                      _const_spec(w1n.shape), _const_spec(wds.shape)],
            out_specs=(_sample_spec(Cout, L), _sample_spec(Cout, L),
                       _const_spec((Cout, 4)))),
        compiler_params=cparams_acc,
    )(x, w1p, w1m, w1n, wds)

    # tiny per-channel finalize (fold BN into one scale+shift) -- plain XLA ops
    fold1 = _fold_bn(stats1[:, 0], stats1[:, 1], count, params["g1"], params["b1"])
    if has_ds:
        foldds = _fold_bn(stats1[:, 2], stats1[:, 3], count,
                          params["gds"], params["bds"])
    else:
        foldds = jnp.stack([jnp.ones((Cout,), jnp.float32),
                            jnp.zeros((Cout,), jnp.float32)], axis=1)

    # --- pass 2: folded bn1 + relu + conv2, batch statistics for bn2 ------------------
    c2_raw, stats2 = pl.pallas_call(
        _bn1_relu_conv2_kernel,
        out_shape=(jax.ShapeDtypeStruct((N, Cout, L), jnp.float32),
                   jax.ShapeDtypeStruct((Cout, 2), jnp.float32)),
        grid_spec=pltpu.PrefetchScalarGridSpec(
            num_scalar_prefetch=0,
            grid=(N,),
            in_specs=[_sample_spec(Cout, L), _const_spec((Cout, 2)),
                      _const_spec(w2p.shape), _const_spec(w2m.shape),
                      _const_spec(w2n.shape)],
            out_specs=(_sample_spec(Cout, L), _const_spec((Cout, 2)))),
        compiler_params=cparams_acc,
    )(c1_raw, fold1, w2p, w2m, w2n)

    fold2 = _fold_bn(stats2[:, 0], stats2[:, 1], count, params["g2"], params["b2"])

    # --- pass 3: folded bn2 + folded downsample-bn + residual add + relu --------------
    out = pl.pallas_call(
        _finalize_kernel,
        out_shape=jax.ShapeDtypeStruct((N, Cout, L), x.dtype),
        grid_spec=pltpu.PrefetchScalarGridSpec(
            num_scalar_prefetch=0,
            grid=(N,),
            in_specs=[_sample_spec(Cout, L), _sample_spec(Cout, L),
                      _const_spec((Cout, 2)), _const_spec((Cout, 2))],
            out_specs=_sample_spec(Cout, L)),
        compiler_params=cparams_par,
    )(c2_raw, ds_raw, fold2, foldds)

    # TODO(synk): emit batch mean/var as extra outputs if running_mean/running_var
    #             updates are needed for PyTorch module-state parity.
    return out


# ---------------- pure-JAX reference (numerical check) ----------------
def ref_residual_block(x_ncl, params):
    def conv1d(x, w, pad):
        return jax.lax.conv_general_dilated(
            x, w, window_strides=(1,), padding=[(pad, pad)],
            dimension_numbers=("NCH", "OIH", "NCH"))

    def bn_train(y, g, b):
        m = jnp.mean(y, axis=(0, 2), keepdims=True)
        v = jnp.mean((y - m) ** 2, axis=(0, 2), keepdims=True)
        return (y - m) * jax.lax.rsqrt(v + EPS) * g[None, :, None] + b[None, :, None]

    h = jax.nn.relu(bn_train(conv1d(x_ncl, params["w1"], 1), params["g1"], params["b1"]))
    y = bn_train(conv1d(h, params["w2"], 1), params["g2"], params["b2"])
    if "wds" in params:
        r = bn_train(conv1d(x_ncl, params["wds"], 0), params["gds"], params["bds"])
    else:
        r = x_ncl
    return jax.nn.relu(y + r)


def make_params(key, cin, cout, with_downsample):
    ks = jax.random.split(key, 9)
    p = {
        "w1": 0.3 * jax.random.normal(ks[0], (cout, cin, 3), jnp.float32),
        "g1": 1.0 + 0.1 * jax.random.normal(ks[1], (cout,), jnp.float32),
        "b1": 0.1 * jax.random.normal(ks[2], (cout,), jnp.float32),
        "w2": 0.3 * jax.random.normal(ks[3], (cout, cout, 3), jnp.float32),
        "g2": 1.0 + 0.1 * jax.random.normal(ks[4], (cout,), jnp.float32),
        "b2": 0.1 * jax.random.normal(ks[5], (cout,), jnp.float32),
    }
    if with_downsample:
        p["wds"] = 0.3 * jax.random.normal(ks[6], (cout, cin, 1), jnp.float32)
        p["gds"] = 1.0 + 0.1 * jax.random.normal(ks[7], (cout,), jnp.float32)
        p["bds"] = 0.1 * jax.random.normal(ks[8], (cout,), jnp.float32)
    return p


def _check(name, out, ref, atol, rtol):
    if out.shape != ref.shape:
        raise AssertionError(f"{name}: shape {out.shape} vs {ref.shape}")
    if not jnp.allclose(out, ref, atol=atol, rtol=rtol):
        raise AssertionError(f"{name}: max abs err {jnp.max(jnp.abs(out - ref))}")


if __name__ == "__main__":
    key = jax.random.PRNGKey(0)
    k_par, k_x, k_par2, k_x2 = jax.random.split(key, 4)

    # Small shapes, but L is a multiple of 128 so per-sample tiles are lane-dense.
    N, Cin, Cout, L = 4, 4, 8, 128

    # case 1: projection shortcut (in_channels != out_channels)
    params = make_params(k_par, Cin, Cout, with_downsample=True)
    x = jax.random.normal(k_x, (N, Cin, L), jnp.float32)
    ref = ref_residual_block(x, params)

    out_f32 = jax.block_until_ready(residual_block(x, params, matmul_dtype=jnp.float32))
    _check("f32", out_f32, ref, atol=1e-3, rtol=1e-3)

    # bf16 MXU operands (f32 accumulation): ~1e-2-level deviations expected vs f32 ref
    out_bf16 = jax.block_until_ready(residual_block(x, params, matmul_dtype=jnp.bfloat16))
    _check("bf16", out_bf16, ref, atol=8e-2, rtol=8e-2)

    # case 2: identity shortcut (in_channels == out_channels, stride == 1)
    params_id = make_params(k_par2, Cout, Cout, with_downsample=False)
    x2 = jax.random.normal(k_x2, (N, Cout, L), jnp.float32)
    out_id = jax.block_until_ready(residual_block(x2, params_id, matmul_dtype=jnp.float32))
    _check("identity", out_id, ref_residual_block(x2, params_id), atol=1e-3, rtol=1e-3)

    print("KERNEL_OK")
</pallas_src>

<mosaic_0001>
module attributes {stable_mosaic.version = 11 : i64} {
  func.func @_conv1_ds_kernel(%arg0: i32, %arg1: memref<1x4x128xf32, #tpu.memory_space<vmem>>, %arg2: memref<8x4xf32, #tpu.memory_space<vmem>>, %arg3: memref<8x4xf32, #tpu.memory_space<vmem>>, %arg4: memref<8x4xf32, #tpu.memory_space<vmem>>, %arg5: memref<8x4xf32, #tpu.memory_space<vmem>>, %arg6: memref<1x8x128xf32, #tpu.memory_space<vmem>>, %arg7: memref<1x8x128xf32, #tpu.memory_space<vmem>>, %arg8: memref<8x4xf32, #tpu.memory_space<vmem>>) attributes {dimension_semantics = [#tpu.dimension_semantics<arbitrary>], iteration_bounds = array<i64: 4>, scalar_prefetch = 0 : i64, scratch_operands = 0 : i64, tpu.core_type = #tpu.core_type<tc>, window_params = [{transform_indices = @transform_0, window_bounds = array<i64: 1, 4, 128>}, {pipeline_mode = #tpu.pipeline_mode<synchronous>, transform_indices = @transform_1, window_bounds = array<i64: 8, 4>}, {pipeline_mode = #tpu.pipeline_mode<synchronous>, transform_indices = @transform_2, window_bounds = array<i64: 8, 4>}, {pipeline_mode = #tpu.pipeline_mode<synchronous>, transform_indices = @transform_3, window_bounds = array<i64: 8, 4>}, {pipeline_mode = #tpu.pipeline_mode<synchronous>, transform_indices = @transform_4, window_bounds = array<i64: 8, 4>}, {transform_indices = @transform_5, window_bounds = array<i64: 1, 8, 128>}, {transform_indices = @transform_6, window_bounds = array<i64: 1, 8, 128>}, {pipeline_mode = #tpu.pipeline_mode<synchronous>, transform_indices = @transform_7, window_bounds = array<i64: 8, 4>}]} {
    %c0 = arith.constant 0 : index
    %c0_0 = arith.constant 0 : index
    %c0_1 = arith.constant 0 : index
    %0 = vector.load %arg1[%c0, %c0_0, %c0_1] : memref<1x4x128xf32, #tpu.memory_space<vmem>>, vector<1x4x128xf32>
    %1 = vector.shape_cast %0 : vector<1x4x128xf32> to vector<4x128xf32>
    %2 = tpu.iota {dimensions = array<i32: 1>} : vector<1x128xi32>
    %cst = arith.constant 0.000000e+00 : f32
    %3 = vector.broadcast %cst : f32 to vector<4x128xf32>
    %c0_i32 = arith.constant 0 : i32
    %4 = vector.broadcast %c0_i32 : i32 to vector<1x128xi32>
    %5 = arith.cmpi eq, %2, %4 : vector<1x128xi32>
    %6 = vector.extract_strided_slice %1 {offsets = [0, 127], sizes = [4, 1], strides = [1, 1]} : vector<4x128xf32> to vector<4x1xf32>
    %7 = vector.extract_strided_slice %1 {offsets = [0, 0], sizes = [4, 127], strides = [1, 1]} : vector<4x128xf32> to vector<4x127xf32>
    %8 = tpu.concatenate %6, %7 in 1 : vector<4x1xf32>, vector<4x127xf32> -> vector<4x128xf32>
    %9 = vector.shape_cast %5 : vector<1x128xi1> to vector<1x128xi1>
    %10 = vector.broadcast %9 : vector<1x128xi1> to vector<4x128xi1>
    %11 = arith.select %10, %3, %8 : vector<4x128xi1>, vector<4x128xf32>
    %c127_i32 = arith.constant 127 : i32
    %12 = vector.broadcast %c127_i32 : i32 to vector<1x128xi32>
    %13 = arith.cmpi eq, %2, %12 : vector<1x128xi32>
    %14 = vector.extract_strided_slice %1 {offsets = [0, 1], sizes = [4, 127], strides = [1, 1]} : vector<4x128xf32> to vector<4x127xf32>
    %15 = vector.extract_strided_slice %1 {offsets = [0, 0], sizes = [4, 1], strides = [1, 1]} : vector<4x128xf32> to vector<4x1xf32>
    %16 = tpu.concatenate %14, %15 in 1 : vector<4x127xf32>, vector<4x1xf32> -> vector<4x128xf32>
    %17 = vector.shape_cast %13 : vector<1x128xi1> to vector<1x128xi1>
    %18 = vector.broadcast %17 : vector<1x128xi1> to vector<4x128xi1>
    %19 = arith.select %18, %3, %16 : vector<4x128xi1>, vector<4x128xf32>
    %c0_2 = arith.constant 0 : index
    %c0_3 = arith.constant 0 : index
    %20 = vector.load %arg2[%c0_2, %c0_3] : memref<8x4xf32, #tpu.memory_space<vmem>>, vector<8x4xf32>
    %cst_4 = arith.constant dense<0.000000e+00> : vector<8x128xf32>
    %21 = tpu.matmul %20, %11, %cst_4 {dimension_numbers = #tpu.dot_dimension_numbers<[1], [0], [0], [1], [0, 0, 1, 1], [], []>} : vector<8x4xf32>, vector<4x128xf32>, vector<8x128xf32> -> vector<8x128xf32>
    %c0_5 = arith.constant 0 : index
    %c0_6 = arith.constant 0 : index
    %22 = vector.load %arg3[%c0_5, %c0_6] : memref<8x4xf32, #tpu.memory_space<vmem>>, vector<8x4xf32>
    %cst_7 = arith.constant dense<0.000000e+00> : vector<8x128xf32>
    %23 = tpu.matmul %22, %1, %cst_7 {dimension_numbers = #tpu.dot_dimension_numbers<[1], [0], [0], [1], [0, 0, 1, 1], [], []>} : vector<8x4xf32>, vector<4x128xf32>, vector<8x128xf32> -> vector<8x128xf32>
    %24 = arith.addf %21, %23 : vector<8x128xf32>
    %c0_8 = arith.constant 0 : index
    %c0_9 = arith.constant 0 : index
    %25 = vector.load %arg4[%c0_8, %c0_9] : memref<8x4xf32, #tpu.memory_space<vmem>>, vector<8x4xf32>
    %cst_10 = arith.constant dense<0.000000e+00> : vector<8x128xf32>
    %26 = tpu.matmul %25, %19, %cst_10 {dimension_numbers = #tpu.dot_dimension_numbers<[1], [0], [0], [1], [0, 0, 1, 1], [], []>} : vector<8x4xf32>, vector<4x128xf32>, vector<8x128xf32> -> vector<8x128xf32>
    %27 = arith.addf %24, %26 : vector<8x128xf32>
    %c0_11 = arith.constant 0 : index
    %c0_12 = arith.constant 0 : index
    %28 = vector.load %arg5[%c0_11, %c0_12] : memref<8x4xf32, #tpu.memory_space<vmem>>, vector<8x4xf32>
    %cst_13 = arith.constant dense<0.000000e+00> : vector<8x128xf32>
    %29 = tpu.matmul %28, %1, %cst_13 {dimension_numbers = #tpu.dot_dimension_numbers<[1], [0], [0], [1], [0, 0, 1, 1], [], []>} : vector<8x4xf32>, vector<4x128xf32>, vector<8x128xf32> -> vector<8x128xf32>
    %c0_14 = arith.constant 0 : index
    %c0_15 = arith.constant 0 : index
    %c0_16 = arith.constant 0 : index
    %30 = vector.load %arg6[%c0_14, %c0_15, %c0_16] : memref<1x8x128xf32, #tpu.memory_space<vmem>>, vector<1x8x128xf32>
    %31 = vector.shape_cast %30 : vector<1x8x128xf32> to vector<8x128xf32>
    %32 = vector.shape_cast %27 : vector<8x128xf32> to vector<1x8x128xf32>
    tpu.vector_store %arg6[%c0_14, %c0_15, %c0_16], %32 {strides = array<i32>} : memref<1x8x128xf32, #tpu.memory_space<vmem>>, vector<1x8x128xf32>,
    %c0_17 = arith.constant 0 : index
    %c0_18 = arith.constant 0 : index
    %c0_19 = arith.constant 0 : index
    %33 = vector.load %arg7[%c0_17, %c0_18, %c0_19] : memref<1x8x128xf32, #tpu.memory_space<vmem>>, vector<1x8x128xf32>
    %34 = vector.shape_cast %33 : vector<1x8x128xf32> to vector<8x128xf32>
    %35 = vector.shape_cast %29 : vector<8x128xf32> to vector<1x8x128xf32>
    tpu.vector_store %arg7[%c0_17, %c0_18, %c0_19], %35 {strides = array<i32>} : memref<1x8x128xf32, #tpu.memory_space<vmem>>, vector<1x8x128xf32>,
    %c0_i32_20 = arith.constant 0 : i32
    %36 = arith.cmpi eq, %arg0, %c0_i32_20 : i32
    %37 = arith.extui %36 : i1 to i32
    %c0_i32_21 = arith.constant 0 : i32
    %38 = arith.cmpi ne, %37, %c0_i32_21 : i32
    scf.if %38 {
      %cst_30 = arith.constant 0.000000e+00 : f32
      %53 = vector.broadcast %cst_30 : f32 to vector<8x4xf32>
      %c0_31 = arith.constant 0 : index
      %c0_32 = arith.constant 0 : index
      %54 = vector.load %arg8[%c0_31, %c0_32] : memref<8x4xf32, #tpu.memory_space<vmem>>, vector<8x4xf32>
      tpu.vector_store %arg8[%c0_31, %c0_32], %53 {strides = array<i32>} : memref<8x4xf32, #tpu.memory_space<vmem>>, vector<8x4xf32>,
    } else {
    }
    %c0_22 = arith.constant 0 : index
    %c0_23 = arith.constant 0 : index
    %39 = vector.load %arg8[%c0_22, %c0_23] : memref<8x4xf32, #tpu.memory_space<vmem>>, vector<8x4xf32>
    %cst_24 = arith.constant dense<0.000000e+00> : vector<8xf32>
    %40 = vector.multi_reduction <add>, %27, %cst_24 [1] : vector<8x128xf32> to vector<8xf32>
    %41 = vector.shape_cast %40 : vector<8xf32> to vector<8x1xf32>
    %42 = arith.mulf %27, %27 : vector<8x128xf32>
    %cst_25 = arith.constant dense<0.000000e+00> : vector<8xf32>
    %43 = vector.multi_reduction <add>, %42, %cst_25 [1] : vector<8x128xf32> to vector<8xf32>
    %44 = vector.shape_cast %43 : vector<8xf32> to vector<8x1xf32>
    %cst_26 = arith.constant dense<0.000000e+00> : vector<8xf32>
    %45 = vector.multi_reduction <add>, %29, %cst_26 [1] : vector<8x128xf32> to vector<8xf32>
    %46 = vector.shape_cast %45 : vector<8xf32> to vector<8x1xf32>
    %47 = arith.mulf %29, %29 : vector<8x128xf32>
    %cst_27 = arith.constant dense<0.000000e+00> : vector<8xf32>
    %48 = vector.multi_reduction <add>, %47, %cst_27 [1] : vector<8x128xf32> to vector<8xf32>
    %49 = vector.shape_cast %48 : vector<8xf32> to vector<8x1xf32>
    %50 = tpu.concatenate %41, %44, %46, %49 in 1 : vector<8x1xf32>, vector<8x1xf32>, vector<8x1xf32>, vector<8x1xf32> -> vector<8x4xf32>
    %51 = arith.addf %39, %50 : vector<8x4xf32>
    %c0_28 = arith.constant 0 : index
    %c0_29 = arith.constant 0 : index
    %52 = vector.load %arg8[%c0_28, %c0_29] : memref<8x4xf32, #tpu.memory_space<vmem>>, vector<8x4xf32>
    tpu.vector_store %arg8[%c0_28, %c0_29], %51 {strides = array<i32>} : memref<8x4xf32, #tpu.memory_space<vmem>>, vector<8x4xf32>,
    return
  }
  func.func @transform_0(%arg0: i32) -> (i32, i32, i32) {
    %c0_i32 = arith.constant 0 : i32
    %c0_i32_0 = arith.constant 0 : i32
    %c0_i32_1 = arith.constant 0 : i32
    return %arg0, %c0_i32, %c0_i32_0 : i32, i32, i32
  }
  func.func @transform_1(%arg0: i32) -> (i32, i32) {
    %c0_i32 = arith.constant 0 : i32
    %c0_i32_0 = arith.constant 0 : i32
    %c0_i32_1 = arith.constant 0 : i32
    return %c0_i32, %c0_i32_0 : i32, i32
  }
  func.func @transform_2(%arg0: i32) -> (i32, i32) {
    %c0_i32 = arith.constant 0 : i32
    %c0_i32_0 = arith.constant 0 : i32
    %c0_i32_1 = arith.constant 0 : i32
    return %c0_i32, %c0_i32_0 : i32, i32
  }
  func.func @transform_3(%arg0: i32) -> (i32, i32) {
    %c0_i32 = arith.constant 0 : i32
    %c0_i32_0 = arith.constant 0 : i32
    %c0_i32_1 = arith.constant 0 : i32
    return %c0_i32, %c0_i32_0 : i32, i32
  }
  func.func @transform_4(%arg0: i32) -> (i32, i32) {
    %c0_i32 = arith.constant 0 : i32
    %c0_i32_0 = arith.constant 0 : i32
    %c0_i32_1 = arith.constant 0 : i32
    return %c0_i32, %c0_i32_0 : i32, i32
  }
  func.func @transform_5(%arg0: i32) -> (i32, i32, i32) {
    %c0_i32 = arith.constant 0 : i32
    %c0_i32_0 = arith.constant 0 : i32
    %c0_i32_1 = arith.constant 0 : i32
    return %arg0, %c0_i32, %c0_i32_0 : i32, i32, i32
  }
  func.func @transform_6(%arg0: i32) -> (i32, i32, i32) {
    %c0_i32 = arith.constant 0 : i32
    %c0_i32_0 = arith.constant 0 : i32
    %c0_i32_1 = arith.constant 0 : i32
    return %arg0, %c0_i32, %c0_i32_0 : i32, i32, i32
  }
  func.func @transform_7(%arg0: i32) -> (i32, i32) {
    %c0_i32 = arith.constant 0 : i32
    %c0_i32_0 = arith.constant 0 : i32
    %c0_i32_1 = arith.constant 0 : i32
    return %c0_i32, %c0_i32_0 : i32, i32
  }
}

</mosaic_0001>

<bundles_post_ra>
// kernel: tpu_custom_call.1
= control target key start
LH: loop header
LB: loop body
LE: loop exit
PB: predicated region body
PF: predicated region fallthrough
CT: control target
= control target key end

     0   :  { %s914_s0 = inlined_call_operand.vmem [shape: f32[4,4,128], index: 0, kind: input, shape index: {}]   ;;  %s915_s1 = inlined_call_operand.vmem [shape: f32[8,4], index: 1, kind: input, shape index: {}]   ;;  %s916_s2 = inlined_call_operand.vmem [shape: f32[8,4], index: 2, kind: input, shape index: {}]   ;;  %s917_s3 = inlined_call_operand.vmem [shape: f32[8,4], index: 3, kind: input, shape index: {}]   ;;  %s918_s4 = inlined_call_operand.vmem [shape: f32[8,4], index: 4, kind: input, shape index: {}]   ;;  %s919_s5 = inlined_call_operand.hbm [shape: f32[4,8,128], index: 5, kind: output, shape index: {0}]   ;;  %s920_s6 = inlined_call_operand.hbm [shape: f32[4,8,128], index: 6, kind: output, shape index: {1}]   ;;  %s921_s7 = inlined_call_operand.vmem [shape: f32[8,4], index: 7, kind: output, shape index: {2}]  }
   0x1   :  { %922 = sst [smem:[#allocation8_spill]] %s914_s0 }
   0x2   :  { %13 = vsyncpa [#allocation3], 0 }
   0x3   :  { %15 = vsyncpa [#allocation3 + $0x1], 0 }
   0x4   :  { %16 = vsyncpa [#allocation5], 0 }
   0x5   :  { %18 = vsyncpa [#allocation5 + $0x1], 0  ;;  %s774_s24 = smov 0   ;;  %s776_s25 = smov 0  }
   0x6   :  { %s778_s26 = smov 0   ;;  %s780_s27 = smov 0  }
   0x7 LB: > { %s795_s28 = sadd.s32 4294967295, %s729_s27   ;;  %s566_s29 = sadd.s32 4294967294, %s729_s27   ;;  %s729_s27 = sphi %s780_s27, %s929_s27   ;;  %s725_s26 = sphi %s778_s26, %s928_s26   ;;  %s721_s25 = sphi %s776_s25, %s927_s25   ;;  %s717_s24 = sphi %s774_s24, %s926_s24  }
   0x8   : > { %s799_s30 = sadd.s32 1, %s729_s27   ;;  %s141_s8 = sadd.s32 1, %s725_s26 }
   0x9   : > { %s138_s9 = ssub.s32 %s729_s27, %s799_s30  ;;  %p151_p0 = scmp.ne.s32.totalorder %s725_s26, %s721_s25 }
   0xa   : > { %p139_p1 = scmp.eq.s32.totalorder %s138_s9, 0  ;;  %p152_p2 = scmp.eq.s32.totalorder %s795_s28, 3 }
   0xb   : > { %p157_p3 = scmp.ne.s32.totalorder %s721_s25, %s717_s24  ;;  %p158_p4 = scmp.eq.s32.totalorder %s566_s29, 3 }
   0xc   : > { %s810_s10 = scalar_select %p139_p1, %s725_s26, %s141_s8  }
   0xd   : > { %p812_p5 = por %p152_p2, %p151_p0  ;;  %p816_p6 = por %p158_p4, %p157_p3 }
   0xe   : > { %p569_p7 = scmp.ge.s32.totalorder %s729_s27, 1  ;;  %p242_p8 = scmp.lt.s32.totalorder %s729_s27, 5 }
  0x10   : > { %p243_p9 = pnand %p569_p7, %p242_p8 }
  0x11   : > { %p278_p10 = scmp.lt.s32.totalorder (!%p243_p9), %s795_s28, 3  ;;  %s925_s0 = sld [smem:[#allocation8_spill]] (!%p243_p9) }
  0x12   : > { %246 = sbr.rel (%p243_p9) target bundleno = 422 (0x1a6), region = 40  ;;  %s731_s18 = smov (!%p243_p9), 127  }
  0x13   : > { %s732_s19 = smov (!%p243_p9), 1   ;;  %p581_p11 = scmp.ne.s32.totalorder (!%p243_p9), %s795_s28, 0 }
  0x17   : > { %s279_s13 = scalar_select %p278_p10, %s795_s28, 3  ;;  %vm307_vm0 = vcmask 1043456   ;;  %vm303_vm1 = vcmask 31744   ;;  %v384_v1 = vld [vmem:[%s918_s4] sm:$0xff]  ;;  %vm290_vm2 = vcmask 7168   ;;  %v283_v3 = vlaneseq }
  0x18   : > { %v302_v2 = vld [vmem:[%s916_s2] sm:$0xff] }
  0x19   : > { %s572_s14 = sshll.u32 %s279_s13, 2  ;;  %v284_v4 = vand.u32 127, %v283_v3  ;;  %v356_v6 = vld [vmem:[%s917_s3] sm:$0xff] }
  0x1a   : > { %s281_s17 = scalar_lea.vmem %s925_s0, %s572_s14  ;;  %v301_v9 = vld [vmem:[%s915_s1] sm:$0xff]  ;;  %s848_s14 = sand.u32 1, %s721_s25  }
  0x1b   : > { %v282_v0 = vld [vmem:[%s281_s17] sm:$0xf]  ;;  %vm294_vm3 = vcmp.eq.s32.totalorder %v284_v4, 127  ;;  %vm285_vm4 = vcmp.eq.s32.totalorder %v284_v4, 0  ;;  %s570_s15 = sshll.u32 %s848_s14, 3 }
  0x1c   : > { %295 = vrot.lane.b32.xlu0 %v282_v0, %s731_s18  ;;  %579 = vmatpush.msk.msra.mxu3 %vm307_vm0, %v282_v0  ;;  %s851_s16 = scalar_lea.vmem [#allocation4], %s570_s15  ;;  %s268_s17 = scalar_lea.vmem [#allocation2], %s570_s15 }
  0x1d   : > { %573 = vmatpush.msk.msra.mxu0 %vm307_vm0, %v282_v0  ;;  %580 = vmatmul.msk.f32.vlgmr.msra.gmra.mxu3 %vm303_vm1, %v384_v1 }
  0x1e   : > { %574 = vmatmul.msk.f32.vlgmr.msra.gmra.mxu0 %vm303_vm1, %v302_v2 }
  0x24   : > { %287 = vrot.lane.b32.xlu0 %v282_v0, %s732_s19 }
  0x8e   : > { %v296_v5 = vpop.permute.xlu0 %295 }
  0x8f   : > { %v300_v7 = vsel %vm294_vm3, 0.0, %v296_v5 }
  0x90   : > { %577 = vmatpush.msk.msra.mxu2 %vm307_vm0, %v300_v7 }
  0x91   : > { %578 = vmatmul.msk.f32.vlgmr.msra.gmra.mxu2 %vm303_vm1, %v356_v6 }
  0x96   : > { %v288_v8 = vpop.permute.xlu0 %287 }
  0x97   : > { %v293_v10 = vsel %vm285_vm4, 0.0, %v288_v8 }
  0x98   : > { %575 = vmatpush.msk.msra.mxu1 %vm307_vm0, %v293_v10 }
  0x99   : > { %576 = vmatmul.msk.f32.vlgmr.msra.gmra.mxu1 %vm303_vm1, %v301_v9 }
  0x9b   : > { %v327_v12 = vpop.f32.mrf.mxu0 }
  0xa0   : > { %v405_v11 = vpop.f32.mrf.mxu3 }
  0xa1   : > { %409 = vst [vmem:[%s851_s16] sm:$0xff] %v405_v11 }
 0x114   : > { %v380_v14 = vpop.f32.mrf.mxu2 }
 0x116   : > { %v353_v13 = vpop.f32.mrf.mxu1 }
 0x117   : > { %v354_v15 = vadd.f32 %v353_v13, %v327_v12  ;;  %413 = sbr.rel (%p581_p11) target bundleno = 286 (0x11e), region = 44 }
 0x119   : > { %v383_v16 = vadd.f32 %v380_v14, %v354_v15 }
 0x11b   : > { %408 = vst [vmem:[%s268_s17] sm:$0xff] %v383_v16 }
 0x11c   : > { %v733_v17 = vmov 0.0  }
 0x11d   : > { %414 = vst.msk [vmem:[%s921_s7] sm:$0xff] %vm303_vm1, %v733_v17 }
 0x11e PF: > { %416 = vadd.xlane.f32.xlu0 %v383_v16  ;;  %421 = vadd.xlane.f32.xlu1 %v405_v11  ;;  %s584_s20 = sshll.u32 %s795_s28, 3  ;;  %s451_s29 = sshll.u32 %s268_s17, 4  ;;  %v418_v18 = vmul.f32 %v383_v16, %v383_v16  ;;  %v423_v19 = vmul.f32 %v405_v11, %v405_v11  ;;  %s452_s29 = int_to_ptr.vmem [resolvable:$true] %s451_s29 }
 0x11f   : > { %s449_s23 = scalar_lea.hbm %s919_s5, %s584_s20  ;;  %s434_s9 = scalar_lea.sflag [#allocation3], %s848_s14 }
 0x120   : > { %s453_s8 = sshll.u32 %s449_s23, 4  ;;  %s655_s19 = scalar_lea.hbm %s919_s5, 32  ;;  %s454_s8 = int_to_ptr.hbm [resolvable:$true] %s453_s8 }
 0x121   : > { %s649_s13 = sshra.s32 %s454_s8, 4  ;;  %s650_s13 = int_to_ptr.hbm [resolvable:$true] %s649_s13 }
 0x122   : > { %s651_s15 = scalar_lea.hbm %s650_s13, 8  ;;  %p656_p1 = scmp.lt.s32.totalorder %s650_s13, %s919_s5 }
 0x123   : > { %p652_p12 = scmp.ne.s32.totalorder %s650_s13, %s651_s15  ;;  %p657_p2 = scmp.lt.s32.totalorder %s655_s19, %s651_s15 }
 0x125   : > { %p653_p13 = pnand %p652_p12, %p812_p5  ;;  %p658_p3 = por %p657_p2, %p656_p1 }
 0x127   : > { %p654_p0 = pneg %p653_p13 }
 0x129   : > { %p659_p4 = pnand %p658_p3, %p654_p0 }
 0x12b   : > { %662 = shalt.err (!%p659_p4)
}
 0x12c   : > { %588 = dma.vmem_to_hbm [thread:$0]  (%p812_p5), %s452_s29, 128, %s454_s8, %s434_s9   ;;  %419 = vadd.xlane.f32.xlu0 %v418_v18  ;;  %424 = vadd.xlane.f32.xlu1 %v423_v19 }
 0x12d   : > { %s463_s0 = scalar_lea.hbm %s920_s6, %s584_s20  ;;  %s465_s18 = sshll.u32 %s851_s16, 4  ;;  %s466_s18 = int_to_ptr.vmem [resolvable:$true] %s465_s18 }
 0x12e   : > { %s467_s28 = sshll.u32 %s463_s0, 4  ;;  %s439_s13 = scalar_lea.sflag [#allocation5], %s848_s14  ;;  %s468_s28 = int_to_ptr.hbm [resolvable:$true] %s467_s28 }
 0x12f   : > { %s677_s15 = sshra.s32 %s468_s28, 4  ;;  %s683_s8 = scalar_lea.hbm %s920_s6, 32  ;;  %s678_s15 = int_to_ptr.hbm [resolvable:$true] %s677_s15 }
 0x130   : > { %s679_s19 = scalar_lea.hbm %s678_s15, 8  ;;  %p684_p10 = scmp.lt.s32.totalorder %s678_s15, %s920_s6 }
 0x131   : > { %p680_p7 = scmp.ne.s32.totalorder %s678_s15, %s679_s19  ;;  %p685_p11 = scmp.lt.s32.totalorder %s683_s8, %s679_s19 }
 0x133   : > { %p681_p8 = pnand %p680_p7, %p812_p5  ;;  %p686_p12 = por %p685_p11, %p684_p10 }
 0x135   : > { %p682_p9 = pneg %p681_p8 }
 0x137   : > { %p687_p13 = pnand %p686_p12, %p682_p9 }
 0x139   : > { %690 = shalt.err (!%p687_p13)
}
 0x13a   : > { %589 = dma.vmem_to_hbm [thread:$0]  (%p812_p5), %s466_s18, 128, %s468_s28, %s439_s13   ;;  %vm427_vm5 = vcmask 15360   ;;  %vm429_vm6 = vcmask 23552   ;;  %v415_v25 = vld [vmem:[%s921_s7] sm:$0xff] }
 0x191   : > { %v417_v20 = vpop.xlane.xlu0 %416  ;;  %v422_v21 = vpop.xlane.xlu1 %421 }
 0x19f   : > { %v420_v22 = vpop.xlane.xlu0 %419  ;;  %v425_v23 = vpop.xlane.xlu1 %424 }
 0x1a0   : > { %v426_v24 = vsel %vm290_vm2, %v417_v20, %v420_v22 }
 0x1a1   : > { %v428_v26 = vsel %vm427_vm5, %v426_v24, %v422_v21 }
 0x1a2   : > { %v430_v27 = vsel %vm429_vm6, %v428_v26, %v425_v23 }
 0x1a3   : > { %v431_v28 = vadd.f32 %v430_v27, %v415_v25 }
 0x1a5   : > { %432 = vst.msk [vmem:[%s921_s7] sm:$0xff] %vm303_vm1, %v431_v28 }
 0x1a6 PF: > { %p599_p5 = scmp.ge.s32.totalorder %s729_s27, 2  ;;  %s485_s11 = sand.u32 1, %s717_s24  }
 0x1a7   : > { %s486_s17 = scalar_lea.sflag [#allocation3], %s485_s11 }
 0x1a8   : > { %p593_p0 = pnand %p599_p5, %p816_p6 }
 0x1aa   : > { %p594_p1 = pneg %p593_p0 }
 0x1ac   : > { %708 = dma.done.wait (%p594_p1), %s486_s17, 128  }
 0x1ad   : > { %710 = vsyncadd (%p594_p1), %s486_s17, 4294967168  ;;  %s496_s23 = scalar_lea.sflag [#allocation5], %s485_s11 }
 0x1ae   : > { %712 = dma.done.wait (%p594_p1), %s496_s23, 128  }
 0x1af   : > { %714 = vsyncadd (%p594_p1), %s496_s23, 4294967168  ;;  %p21_p2 = scmp.ge.s32.totalorder %s799_s30, 6   ;;  %s926_s24 = smov %s721_s25 }
 0x1b0   : > { %s927_s25 = smov %s725_s26  ;;  %s928_s26 = smov %s810_s10 }
 0x1b1   : > { %s929_s27 = smov %s799_s30  ;;  %23 = sbr.rel (!%p21_p2) target bundleno = 7 (0x7), region = 104 }
 0x1b6   :  { %502 = vsyncpa [#allocation3], 1 }
 0x1b7   :  { %504 = vsyncpa [#allocation3 + $0x1], 1 }
 0x1b8   :  { %505 = vsyncpa [#allocation5], 1 }
 0x1b9   :  { %507 = vsyncpa [#allocation5 + $0x1], 1 }

</bundles_post_ra>
